<compile_context>
chip_gen: v7x
topology: tpu7x:2x2x1
jax: 0.10.0
libtpu: 0.0.40
codegen_flags: <defaults>
</compile_context>

<pallas_src>
import math
import functools

import jax
import jax.numpy as jnp
from jax.experimental import pallas as pl
from jax.experimental.pallas import tpu as pltpu  # noqa: F401  (TPU backend registration)


def _mha_kernel(x_ref, mem_ref, wq_ref, wkv_ref, woh_ref, o_ref, *, B, T, S, D, H):
    """Fused multi-head attention, whole problem in one grid-less invocation.

    x_ref   : (B*T, D)   bf16  query rows (batch folded into rows)
    mem_ref : (B*S, D)   bf16  key/value rows
    wq_ref  : (D, D)     bf16  Wq^T with 1/sqrt(hd) folded in
    wkv_ref : (D, 2*D)   bf16  [Wk^T | Wv^T]
    woh_ref : (H, hd, D) bf16  per-head blocks of Wo^T
    o_ref   : (B*T, D)   f32
    """
    hd = D // H

    x = x_ref[...]      # bf16 straight into the MXU
    mem = mem_ref[...]

    # Fused projections: 2 MXU pushes instead of 12 per-head dots.
    q = jnp.dot(x, wq_ref[...], preferred_element_type=jnp.float32)       # (B*T, D)  f32
    kv = jnp.dot(mem, wkv_ref[...], preferred_element_type=jnp.float32)   # (B*S, 2D) f32

    # Re-narrow once for the attention matmuls (softmax math stays f32).
    q_b = q.astype(jnp.bfloat16)
    kv_b = kv.astype(jnp.bfloat16)

    acc = jnp.zeros((B * T, D), jnp.float32)   # output accumulator, single store at the end
    for h in range(H):
        lo = h * hd
        # Head split = static lane slice of the fused result + leading-axis reshape (no
        # sublane slicing, no (B*H) stack interleave).
        q_h = q_b[:, lo:lo + hd].reshape(B, T, hd)
        k_h = kv_b[:, lo:lo + hd].reshape(B, S, hd)
        v_h = kv_b[:, D + lo:D + lo + hd].reshape(B, S, hd)

        # Scaled-dot-product attention batched over B (scale already folded into Wq).
        s = jnp.einsum("bqd,bkd->bqk", q_h, k_h,
                       preferred_element_type=jnp.float32)                 # (B, T, S) f32
        s = s - jnp.max(s, axis=-1, keepdims=True)
        p = jnp.exp(s)
        p = p / jnp.sum(p, axis=-1, keepdims=True)                         # exact normalization
        ctx = jnp.einsum("bqk,bkd->bqd", p.astype(jnp.bfloat16), v_h,
                         preferred_element_type=jnp.float32)               # (B, T, hd) f32

        # Accumulating per-head output projection: acc += ctx_h @ Wo_h (no concat, no
        # B-tiled Wo, no (B*H, T, D) intermediate).
        acc = acc + jnp.dot(ctx.reshape(B * T, hd).astype(jnp.bfloat16), woh_ref[h],
                            preferred_element_type=jnp.float32)            # (B*T, D)

    o_ref[...] = acc.astype(o_ref.dtype)   # one full-slab store


@functools.partial(jax.jit, static_argnames=("n_heads",))
def multihead_attention_pallas(x, mem, wq, wk, wv, wo, *, n_heads):
    """x: (B, T, D) queries; mem: (B, S, D) keys/values (mem=x gives the encoder's self-attn).

    Weights follow the PyTorch convention: W is (D, D) applied as y = x @ W.T.
    Dropout = 0 (inference); causal=False (encoder default); no bias.
    """
    B, T, D = x.shape
    S = mem.shape[1]
    assert D % n_heads == 0
    hd = D // n_heads
    scale = 1.0 / math.sqrt(hd)

    # Host-side layout plumbing (free): pre-transpose, fold the softmax scale into Wq,
    # fuse K/V weights along the output axis, split Wo^T into per-head blocks, cast to bf16.
    wq_t = (wq.T * jnp.asarray(scale, wq.dtype)).astype(jnp.bfloat16)             # (D, D)
    wkv_t = jnp.concatenate([wk.T, wv.T], axis=1).astype(jnp.bfloat16)            # (D, 2D)
    wo_h = wo.T.reshape(n_heads, hd, D).astype(jnp.bfloat16)                      # (H, hd, D)

    x2d = x.reshape(B * T, D).astype(jnp.bfloat16)       # fold batch into rows
    mem2d = mem.reshape(B * S, D).astype(jnp.bfloat16)

    kernel = functools.partial(_mha_kernel, B=B, T=T, S=S, D=D, H=n_heads)
    out2d = pl.pallas_call(
        kernel,
        out_shape=jax.ShapeDtypeStruct((B * T, D), x.dtype),
        # No grid / BlockSpecs: the whole (tiny, ~20 KiB) problem lives in VMEM and runs in
        # one step — no per-grid-step pipeline overhead (correct for 1-TC v5e/v6e).
    )(x2d, mem2d, wq_t, wkv_t, wo_h)
    return out2d.reshape(B, T, D)


def multihead_attention_ref(x, mem, wq, wk, wv, wo, n_heads):
    """Plain-JAX f32 reference mirroring nn.MultiheadAttention (bias=False, batch_first)."""
    B, T, D = x.shape
    S = mem.shape[1]
    hd = D // n_heads
    q = jnp.einsum("btd,ed->bte", x, wq).reshape(B, T, n_heads, hd)
    k = jnp.einsum("bsd,ed->bse", mem, wk).reshape(B, S, n_heads, hd)
    v = jnp.einsum("bsd,ed->bse", mem, wv).reshape(B, S, n_heads, hd)
    scores = jnp.einsum("bthd,bshd->bhts", q, k) / math.sqrt(hd)
    p = jax.nn.softmax(scores, axis=-1)
    ctx = jnp.einsum("bhts,bshd->bthd", p, v).reshape(B, T, D)
    return jnp.einsum("btd,ed->bte", ctx, wo)


if __name__ == "__main__":
    # Small shapes consistent with the module's encoder: d_model=32, n_heads=4, seq=8, batch=2.
    B, T, S, D, H = 2, 8, 8, 32, 4

    key = jax.random.PRNGKey(0)
    kx, kmem, kin, kout = jax.random.split(key, 4)

    x = jax.random.normal(kx, (B, T, D), dtype=jnp.float32)
    mem = jax.random.normal(kmem, (B, S, D), dtype=jnp.float32)

    # Deterministic parameter init mirroring nn.MultiheadAttention:
    # in_proj_weight (3D, D) ~ xavier_uniform, out_proj.weight (D, D) ~ U(-1/sqrt(D), 1/sqrt(D)).
    xav = math.sqrt(6.0 / (3 * D + D))
    in_proj = jax.random.uniform(kin, (3 * D, D), minval=-xav, maxval=xav, dtype=jnp.float32)
    wq, wk, wv = in_proj[:D], in_proj[D:2 * D], in_proj[2 * D:]
    bound = 1.0 / math.sqrt(D)
    wo = jax.random.uniform(kout, (D, D), minval=-bound, maxval=bound, dtype=jnp.float32)

    # Tolerance reflects bf16 MXU operands (the f32 reference stays full precision); the
    # softmax normalization itself is exact (no approximate reciprocal).
    ATOL = RTOL = 2e-2

    # Self-attention exactly as used by the GreyTransformer encoder: mha(x, x, x), non-causal.
    out_self = jax.block_until_ready(multihead_attention_pallas(x, x, wq, wk, wv, wo, n_heads=H))
    ref_self = multihead_attention_ref(x, x, wq, wk, wv, wo, H)
    assert out_self.shape == (B, T, D)
    assert jnp.allclose(out_self, ref_self, atol=ATOL, rtol=RTOL), \
        float(jnp.max(jnp.abs(out_self - ref_self)))

    # Generic (cross) path with a distinct memory sequence.
    out_x = jax.block_until_ready(multihead_attention_pallas(x, mem, wq, wk, wv, wo, n_heads=H))
    ref_x = multihead_attention_ref(x, mem, wq, wk, wv, wo, H)
    assert jnp.allclose(out_x, ref_x, atol=ATOL, rtol=RTOL), \
        float(jnp.max(jnp.abs(out_x - ref_x)))

    print("KERNEL_OK")
</pallas_src>

<mosaic_0001>
module attributes {stable_mosaic.version = 11 : i64} {
  func.func @_mha_kernel(%arg0: memref<16x32xbf16, #tpu.memory_space<vmem>>, %arg1: memref<16x32xbf16, #tpu.memory_space<vmem>>, %arg2: memref<32x32xbf16, #tpu.memory_space<vmem>>, %arg3: memref<32x64xbf16, #tpu.memory_space<vmem>>, %arg4: memref<4x8x32xbf16, #tpu.memory_space<vmem>>, %arg5: memref<16x32xf32, #tpu.memory_space<vmem>>) attributes {dimension_semantics = [], scalar_prefetch = 0 : i64, scratch_operands = 0 : i64, tpu.core_type = #tpu.core_type<tc>} {
    %c0 = arith.constant 0 : index
    %c0_0 = arith.constant 0 : index
    %0 = vector.load %arg0[%c0, %c0_0] : memref<16x32xbf16, #tpu.memory_space<vmem>>, vector<16x32xbf16>
    %c0_1 = arith.constant 0 : index
    %c0_2 = arith.constant 0 : index
    %1 = vector.load %arg1[%c0_1, %c0_2] : memref<16x32xbf16, #tpu.memory_space<vmem>>, vector<16x32xbf16>
    %c0_3 = arith.constant 0 : index
    %c0_4 = arith.constant 0 : index
    %2 = vector.load %arg2[%c0_3, %c0_4] : memref<32x32xbf16, #tpu.memory_space<vmem>>, vector<32x32xbf16>
    %cst = arith.constant dense<0.000000e+00> : vector<16x32xf32>
    %3 = tpu.matmul %0, %2, %cst {dimension_numbers = #tpu.dot_dimension_numbers<[1], [0], [0], [1], [0, 0, 1, 1], [], []>} : vector<16x32xbf16>, vector<32x32xbf16>, vector<16x32xf32> -> vector<16x32xf32>
    %c0_5 = arith.constant 0 : index
    %c0_6 = arith.constant 0 : index
    %4 = vector.load %arg3[%c0_5, %c0_6] : memref<32x64xbf16, #tpu.memory_space<vmem>>, vector<32x64xbf16>
    %cst_7 = arith.constant dense<0.000000e+00> : vector<16x64xf32>
    %5 = tpu.matmul %1, %4, %cst_7 {dimension_numbers = #tpu.dot_dimension_numbers<[1], [0], [0], [1], [0, 0, 1, 1], [], []>} : vector<16x32xbf16>, vector<32x64xbf16>, vector<16x64xf32> -> vector<16x64xf32>
    %6 = arith.truncf %3 : vector<16x32xf32> to vector<16x32xbf16>
    %7 = arith.truncf %5 : vector<16x64xf32> to vector<16x64xbf16>
    %cst_8 = arith.constant 0.000000e+00 : f32
    %8 = vector.broadcast %cst_8 : f32 to vector<16x32xf32>
    %9 = vector.extract_strided_slice %6 {offsets = [0, 0], sizes = [16, 8], strides = [1, 1]} : vector<16x32xbf16> to vector<16x8xbf16>
    %10 = vector.shape_cast %9 : vector<16x8xbf16> to vector<2x8x8xbf16>
    %11 = vector.extract_strided_slice %7 {offsets = [0, 0], sizes = [16, 8], strides = [1, 1]} : vector<16x64xbf16> to vector<16x8xbf16>
    %12 = vector.shape_cast %11 : vector<16x8xbf16> to vector<2x8x8xbf16>
    %13 = vector.extract_strided_slice %7 {offsets = [0, 32], sizes = [16, 8], strides = [1, 1]} : vector<16x64xbf16> to vector<16x8xbf16>
    %14 = vector.shape_cast %13 : vector<16x8xbf16> to vector<2x8x8xbf16>
    "tpu.trace_start"() <{level = 10 : i32, message = "bqd,bkd->bqk"}> : () -> ()
    %cst_9 = arith.constant dense<0.000000e+00> : vector<2x8x8xf32>
    %15 = tpu.matmul %10, %12, %cst_9 {dimension_numbers = #tpu.dot_dimension_numbers<[2], [2], [1], [1], [0, 0, 0, 1, 1, 1], [0], [0]>} : vector<2x8x8xbf16>, vector<2x8x8xbf16>, vector<2x8x8xf32> -> vector<2x8x8xf32>
    "tpu.trace_stop"() : () -> ()
    %cst_10 = arith.constant dense<0xFF800000> : vector<2x8xf32>
    %16 = vector.multi_reduction <maximumf>, %15, %cst_10 [2] : vector<2x8x8xf32> to vector<2x8xf32>
    %17 = vector.shape_cast %16 : vector<2x8xf32> to vector<2x8x1xf32>
    %18 = vector.broadcast %17 : vector<2x8x1xf32> to vector<2x8x8xf32>
    %19 = arith.subf %15, %18 : vector<2x8x8xf32>
    %20 = math.exp %19 : vector<2x8x8xf32>
    %cst_11 = arith.constant dense<0.000000e+00> : vector<2x8xf32>
    %21 = vector.multi_reduction <add>, %20, %cst_11 [2] : vector<2x8x8xf32> to vector<2x8xf32>
    %22 = vector.shape_cast %21 : vector<2x8xf32> to vector<2x8x1xf32>
    %23 = vector.broadcast %22 : vector<2x8x1xf32> to vector<2x8x8xf32>
    %24 = arith.divf %20, %23 : vector<2x8x8xf32>
    %25 = arith.truncf %24 : vector<2x8x8xf32> to vector<2x8x8xbf16>
    "tpu.trace_start"() <{level = 10 : i32, message = "bqk,bkd->bqd"}> : () -> ()
    %cst_12 = arith.constant dense<0.000000e+00> : vector<2x8x8xf32>
    %26 = tpu.matmul %25, %14, %cst_12 {dimension_numbers = #tpu.dot_dimension_numbers<[2], [1], [1], [2], [0, 0, 0, 1, 1, 2], [0], [0]>} : vector<2x8x8xbf16>, vector<2x8x8xbf16>, vector<2x8x8xf32> -> vector<2x8x8xf32>
    "tpu.trace_stop"() : () -> ()
    %27 = vector.shape_cast %26 : vector<2x8x8xf32> to vector<16x8xf32>
    %28 = arith.truncf %27 : vector<16x8xf32> to vector<16x8xbf16>
    %c0_13 = arith.constant 0 : index
    %c0_14 = arith.constant 0 : index
    %c0_15 = arith.constant 0 : index
    %29 = vector.load %arg4[%c0_13, %c0_14, %c0_15] : memref<4x8x32xbf16, #tpu.memory_space<vmem>>, vector<1x8x32xbf16>
    %30 = vector.shape_cast %29 : vector<1x8x32xbf16> to vector<8x32xbf16>
    %cst_16 = arith.constant dense<0.000000e+00> : vector<16x32xf32>
    %31 = tpu.matmul %28, %30, %cst_16 {dimension_numbers = #tpu.dot_dimension_numbers<[1], [0], [0], [1], [0, 0, 1, 1], [], []>} : vector<16x8xbf16>, vector<8x32xbf16>, vector<16x32xf32> -> vector<16x32xf32>
    %32 = arith.addf %8, %31 : vector<16x32xf32>
    %33 = vector.extract_strided_slice %6 {offsets = [0, 8], sizes = [16, 8], strides = [1, 1]} : vector<16x32xbf16> to vector<16x8xbf16>
    %34 = vector.shape_cast %33 : vector<16x8xbf16> to vector<2x8x8xbf16>
    %35 = vector.extract_strided_slice %7 {offsets = [0, 8], sizes = [16, 8], strides = [1, 1]} : vector<16x64xbf16> to vector<16x8xbf16>
    %36 = vector.shape_cast %35 : vector<16x8xbf16> to vector<2x8x8xbf16>
    %37 = vector.extract_strided_slice %7 {offsets = [0, 40], sizes = [16, 8], strides = [1, 1]} : vector<16x64xbf16> to vector<16x8xbf16>
    %38 = vector.shape_cast %37 : vector<16x8xbf16> to vector<2x8x8xbf16>
    "tpu.trace_start"() <{level = 10 : i32, message = "bqd,bkd->bqk"}> : () -> ()
    %cst_17 = arith.constant dense<0.000000e+00> : vector<2x8x8xf32>
    %39 = tpu.matmul %34, %36, %cst_17 {dimension_numbers = #tpu.dot_dimension_numbers<[2], [2], [1], [1], [0, 0, 0, 1, 1, 1], [0], [0]>} : vector<2x8x8xbf16>, vector<2x8x8xbf16>, vector<2x8x8xf32> -> vector<2x8x8xf32>
    "tpu.trace_stop"() : () -> ()
    %cst_18 = arith.constant dense<0xFF800000> : vector<2x8xf32>
    %40 = vector.multi_reduction <maximumf>, %39, %cst_18 [2] : vector<2x8x8xf32> to vector<2x8xf32>
    %41 = vector.shape_cast %40 : vector<2x8xf32> to vector<2x8x1xf32>
    %42 = vector.broadcast %41 : vector<2x8x1xf32> to vector<2x8x8xf32>
    %43 = arith.subf %39, %42 : vector<2x8x8xf32>
    %44 = math.exp %43 : vector<2x8x8xf32>
    %cst_19 = arith.constant dense<0.000000e+00> : vector<2x8xf32>
    %45 = vector.multi_reduction <add>, %44, %cst_19 [2] : vector<2x8x8xf32> to vector<2x8xf32>
    %46 = vector.shape_cast %45 : vector<2x8xf32> to vector<2x8x1xf32>
    %47 = vector.broadcast %46 : vector<2x8x1xf32> to vector<2x8x8xf32>
    %48 = arith.divf %44, %47 : vector<2x8x8xf32>
    %49 = arith.truncf %48 : vector<2x8x8xf32> to vector<2x8x8xbf16>
    "tpu.trace_start"() <{level = 10 : i32, message = "bqk,bkd->bqd"}> : () -> ()
    %cst_20 = arith.constant dense<0.000000e+00> : vector<2x8x8xf32>
    %50 = tpu.matmul %49, %38, %cst_20 {dimension_numbers = #tpu.dot_dimension_numbers<[2], [1], [1], [2], [0, 0, 0, 1, 1, 2], [0], [0]>} : vector<2x8x8xbf16>, vector<2x8x8xbf16>, vector<2x8x8xf32> -> vector<2x8x8xf32>
    "tpu.trace_stop"() : () -> ()
    %51 = vector.shape_cast %50 : vector<2x8x8xf32> to vector<16x8xf32>
    %52 = arith.truncf %51 : vector<16x8xf32> to vector<16x8xbf16>
    %c1 = arith.constant 1 : index
    %c0_21 = arith.constant 0 : index
    %c0_22 = arith.constant 0 : index
    %53 = vector.load %arg4[%c1, %c0_21, %c0_22] : memref<4x8x32xbf16, #tpu.memory_space<vmem>>, vector<1x8x32xbf16>
    %54 = vector.shape_cast %53 : vector<1x8x32xbf16> to vector<8x32xbf16>
    %cst_23 = arith.constant dense<0.000000e+00> : vector<16x32xf32>
    %55 = tpu.matmul %52, %54, %cst_23 {dimension_numbers = #tpu.dot_dimension_numbers<[1], [0], [0], [1], [0, 0, 1, 1], [], []>} : vector<16x8xbf16>, vector<8x32xbf16>, vector<16x32xf32> -> vector<16x32xf32>
    %56 = arith.addf %32, %55 : vector<16x32xf32>
    %57 = vector.extract_strided_slice %6 {offsets = [0, 16], sizes = [16, 8], strides = [1, 1]} : vector<16x32xbf16> to vector<16x8xbf16>
    %58 = vector.shape_cast %57 : vector<16x8xbf16> to vector<2x8x8xbf16>
    %59 = vector.extract_strided_slice %7 {offsets = [0, 16], sizes = [16, 8], strides = [1, 1]} : vector<16x64xbf16> to vector<16x8xbf16>
    %60 = vector.shape_cast %59 : vector<16x8xbf16> to vector<2x8x8xbf16>
    %61 = vector.extract_strided_slice %7 {offsets = [0, 48], sizes = [16, 8], strides = [1, 1]} : vector<16x64xbf16> to vector<16x8xbf16>
    %62 = vector.shape_cast %61 : vector<16x8xbf16> to vector<2x8x8xbf16>
    "tpu.trace_start"() <{level = 10 : i32, message = "bqd,bkd->bqk"}> : () -> ()
    %cst_24 = arith.constant dense<0.000000e+00> : vector<2x8x8xf32>
    %63 = tpu.matmul %58, %60, %cst_24 {dimension_numbers = #tpu.dot_dimension_numbers<[2], [2], [1], [1], [0, 0, 0, 1, 1, 1], [0], [0]>} : vector<2x8x8xbf16>, vector<2x8x8xbf16>, vector<2x8x8xf32> -> vector<2x8x8xf32>
    "tpu.trace_stop"() : () -> ()
    %cst_25 = arith.constant dense<0xFF800000> : vector<2x8xf32>
    %64 = vector.multi_reduction <maximumf>, %63, %cst_25 [2] : vector<2x8x8xf32> to vector<2x8xf32>
    %65 = vector.shape_cast %64 : vector<2x8xf32> to vector<2x8x1xf32>
    %66 = vector.broadcast %65 : vector<2x8x1xf32> to vector<2x8x8xf32>
    %67 = arith.subf %63, %66 : vector<2x8x8xf32>
    %68 = math.exp %67 : vector<2x8x8xf32>
    %cst_26 = arith.constant dense<0.000000e+00> : vector<2x8xf32>
    %69 = vector.multi_reduction <add>, %68, %cst_26 [2] : vector<2x8x8xf32> to vector<2x8xf32>
    %70 = vector.shape_cast %69 : vector<2x8xf32> to vector<2x8x1xf32>
    %71 = vector.broadcast %70 : vector<2x8x1xf32> to vector<2x8x8xf32>
    %72 = arith.divf %68, %71 : vector<2x8x8xf32>
    %73 = arith.truncf %72 : vector<2x8x8xf32> to vector<2x8x8xbf16>
    "tpu.trace_start"() <{level = 10 : i32, message = "bqk,bkd->bqd"}> : () -> ()
    %cst_27 = arith.constant dense<0.000000e+00> : vector<2x8x8xf32>
    %74 = tpu.matmul %73, %62, %cst_27 {dimension_numbers = #tpu.dot_dimension_numbers<[2], [1], [1], [2], [0, 0, 0, 1, 1, 2], [0], [0]>} : vector<2x8x8xbf16>, vector<2x8x8xbf16>, vector<2x8x8xf32> -> vector<2x8x8xf32>
    "tpu.trace_stop"() : () -> ()
    %75 = vector.shape_cast %74 : vector<2x8x8xf32> to vector<16x8xf32>
    %76 = arith.truncf %75 : vector<16x8xf32> to vector<16x8xbf16>
    %c2 = arith.constant 2 : index
    %c0_28 = arith.constant 0 : index
    %c0_29 = arith.constant 0 : index
    %77 = vector.load %arg4[%c2, %c0_28, %c0_29] : memref<4x8x32xbf16, #tpu.memory_space<vmem>>, vector<1x8x32xbf16>
    %78 = vector.shape_cast %77 : vector<1x8x32xbf16> to vector<8x32xbf16>
    %cst_30 = arith.constant dense<0.000000e+00> : vector<16x32xf32>
    %79 = tpu.matmul %76, %78, %cst_30 {dimension_numbers = #tpu.dot_dimension_numbers<[1], [0], [0], [1], [0, 0, 1, 1], [], []>} : vector<16x8xbf16>, vector<8x32xbf16>, vector<16x32xf32> -> vector<16x32xf32>
    %80 = arith.addf %56, %79 : vector<16x32xf32>
    %81 = vector.extract_strided_slice %6 {offsets = [0, 24], sizes = [16, 8], strides = [1, 1]} : vector<16x32xbf16> to vector<16x8xbf16>
    %82 = vector.shape_cast %81 : vector<16x8xbf16> to vector<2x8x8xbf16>
    %83 = vector.extract_strided_slice %7 {offsets = [0, 24], sizes = [16, 8], strides = [1, 1]} : vector<16x64xbf16> to vector<16x8xbf16>
    %84 = vector.shape_cast %83 : vector<16x8xbf16> to vector<2x8x8xbf16>
    %85 = vector.extract_strided_slice %7 {offsets = [0, 56], sizes = [16, 8], strides = [1, 1]} : vector<16x64xbf16> to vector<16x8xbf16>
    %86 = vector.shape_cast %85 : vector<16x8xbf16> to vector<2x8x8xbf16>
    "tpu.trace_start"() <{level = 10 : i32, message = "bqd,bkd->bqk"}> : () -> ()
    %cst_31 = arith.constant dense<0.000000e+00> : vector<2x8x8xf32>
    %87 = tpu.matmul %82, %84, %cst_31 {dimension_numbers = #tpu.dot_dimension_numbers<[2], [2], [1], [1], [0, 0, 0, 1, 1, 1], [0], [0]>} : vector<2x8x8xbf16>, vector<2x8x8xbf16>, vector<2x8x8xf32> -> vector<2x8x8xf32>
    "tpu.trace_stop"() : () -> ()
    %cst_32 = arith.constant dense<0xFF800000> : vector<2x8xf32>
    %88 = vector.multi_reduction <maximumf>, %87, %cst_32 [2] : vector<2x8x8xf32> to vector<2x8xf32>
    %89 = vector.shape_cast %88 : vector<2x8xf32> to vector<2x8x1xf32>
    %90 = vector.broadcast %89 : vector<2x8x1xf32> to vector<2x8x8xf32>
    %91 = arith.subf %87, %90 : vector<2x8x8xf32>
    %92 = math.exp %91 : vector<2x8x8xf32>
    %cst_33 = arith.constant dense<0.000000e+00> : vector<2x8xf32>
    %93 = vector.multi_reduction <add>, %92, %cst_33 [2] : vector<2x8x8xf32> to vector<2x8xf32>
    %94 = vector.shape_cast %93 : vector<2x8xf32> to vector<2x8x1xf32>
    %95 = vector.broadcast %94 : vector<2x8x1xf32> to vector<2x8x8xf32>
    %96 = arith.divf %92, %95 : vector<2x8x8xf32>
    %97 = arith.truncf %96 : vector<2x8x8xf32> to vector<2x8x8xbf16>
    "tpu.trace_start"() <{level = 10 : i32, message = "bqk,bkd->bqd"}> : () -> ()
    %cst_34 = arith.constant dense<0.000000e+00> : vector<2x8x8xf32>
    %98 = tpu.matmul %97, %86, %cst_34 {dimension_numbers = #tpu.dot_dimension_numbers<[2], [1], [1], [2], [0, 0, 0, 1, 1, 2], [0], [0]>} : vector<2x8x8xbf16>, vector<2x8x8xbf16>, vector<2x8x8xf32> -> vector<2x8x8xf32>
    "tpu.trace_stop"() : () -> ()
    %99 = vector.shape_cast %98 : vector<2x8x8xf32> to vector<16x8xf32>
    %100 = arith.truncf %99 : vector<16x8xf32> to vector<16x8xbf16>
    %c3 = arith.constant 3 : index
    %c0_35 = arith.constant 0 : index
    %c0_36 = arith.constant 0 : index
    %101 = vector.load %arg4[%c3, %c0_35, %c0_36] : memref<4x8x32xbf16, #tpu.memory_space<vmem>>, vector<1x8x32xbf16>
    %102 = vector.shape_cast %101 : vector<1x8x32xbf16> to vector<8x32xbf16>
    %cst_37 = arith.constant dense<0.000000e+00> : vector<16x32xf32>
    %103 = tpu.matmul %100, %102, %cst_37 {dimension_numbers = #tpu.dot_dimension_numbers<[1], [0], [0], [1], [0, 0, 1, 1], [], []>} : vector<16x8xbf16>, vector<8x32xbf16>, vector<16x32xf32> -> vector<16x32xf32>
    %104 = arith.addf %80, %103 : vector<16x32xf32>
    %c0_38 = arith.constant 0 : index
    %c0_39 = arith.constant 0 : index
    %105 = vector.load %arg5[%c0_38, %c0_39] : memref<16x32xf32, #tpu.memory_space<vmem>>, vector<16x32xf32>
    tpu.vector_store %arg5[%c0_38, %c0_39], %104 {strides = array<i32>} : memref<16x32xf32, #tpu.memory_space<vmem>>, vector<16x32xf32>,
    return
  }
}

</mosaic_0001>

<bundles_post_ra>
// kernel: multihead_attention_pallas.1
= control target key start
LH: loop header
LB: loop body
LE: loop exit
PB: predicated region body
PF: predicated region fallthrough
CT: control target
= control target key end

     0   :  { %v1571_v1 = vmov 0.0   ;;  %vm1572_vm0 = vmmov 0   ;;  %vm47_vm1 = vcmask 261120   ;;  %s1836_s0 = inlined_call_operand.vmem [shape: bf16[16,32], index: 0, kind: input, shape index: {}]   ;;  %s1837_s1 = inlined_call_operand.vmem [shape: bf16[16,32], index: 1, kind: input, shape index: {}]   ;;  %s1838_s2 = inlined_call_operand.vmem [shape: bf16[32,32], index: 2, kind: input, shape index: {}]   ;;  %s1839_s3 = inlined_call_operand.vmem [shape: bf16[32,64], index: 3, kind: input, shape index: {}]   ;;  %s1840_s4 = inlined_call_operand.vmem [shape: bf16[4,8,32], index: 4, kind: input, shape index: {}]   ;;  %s1841_s5 = inlined_call_operand.hbm [shape: f32[16,32], index: 5, kind: output, shape index: {}]  }
   0x1   :  { %v1509_v0 = vld [vmem:[%s1838_s2] sm:$0xff]   ;;  %1349 = vmatprep.subr.bf16.mxu1 %v1571_v1  ;;  %1365 = vmatprep.subr.bf16.mxu0 %v1571_v1  ;;  %v1510_v2 = vld [vmem:[%s1838_s2 + $0x8] sm:$0xff]  }
   0x2   :  { %1350 = vmatpush3.bf16.msra.mxu1 %v1509_v0  ;;  %1353 = vmatprep.mubr.msk.bf16.mxu1 %vm1572_vm0, %v1571_v1  ;;  %v1511_v3 = vld [vmem:[%s1836_s0] sm:$0xff]  }
   0x3   :  { %1351 = vmatprep.subr.bf16.mxu1 %v1571_v1  ;;  %1367 = vmatprep.mubr.msk.bf16.mxu0 %vm1572_vm0, %v1571_v1  ;;  %v1512_v4 = vld [vmem:[%s1839_s3] sm:$0xff]  }
   0x6   :  { %1352 = vmatpush3.bf16.msra.mxu1 %v1510_v2 }
   0x7   :  { %10 = vsyncpa [#allocation3], 0  ;;  %1357 = vmatprep.subr.bf16.mxu1 %v1571_v1  ;;  %v1513_v5 = vld [vmem:[%s1839_s3 + $0x8] sm:$0xff]   ;;  %v1514_v6 = vld [vmem:[%s1837_s1] sm:$0xff]   ;;  %vm169_vm2 = vcmask 64512   ;;  %s1573_s1 = smov 96  }
   0x8   :  { %s1574_s3 = smov 120   ;;  %vm291_vm3 = vcmask 1043456   ;;  %s1575_s28 = smov 88  }
   0x9   :  { %1354 = vmatmul.mubr.msk.bf16.vlgmr.msra.gmra.mrb[0].mxu1 %vm47_vm1, %v1511_v3  ;;  %s1576_s29 = smov 112   ;;  %s1577_s30 = smov 80  }
   0xa   :  { %1358 = vmatpush3.bf16.msra.mxu1 %v1512_v4  ;;  %1361 = vmatprep.mubr.msk.bf16.mxu1 %vm1572_vm0, %v1571_v1  ;;  %s1578_s6 = smov 104   ;;  %s1579_s13 = smov 72  }
   0xb   :  { %1359 = vmatprep.subr.bf16.mxu1 %v1571_v1 }
   0xe   :  { %1360 = vmatpush3.bf16.msra.mxu1 %v1513_v5 }
   0xf   :  { %1371 = vmatprep.subr.bf16.mxu1 %v1571_v1 }
  0x11   :  { %1362 = vmatmul.mubr.msk.bf16.vlgmr.msra.gmra.mrb[4].mxu1 %vm47_vm1, %v1514_v6 }
  0x12   :  { %1373 = vmatprep.mubr.msk.bf16.mxu1 %vm1572_vm0, %v1571_v1 }
  0xdc   :  { %v85_v7 = vpop.f32.mrb[0].mxu1 }
  0xdd   :  { %v1355_v8 = vpop.f32.mrb[1].mxu1  ;;  %v1659_v19 = vpack.c.bf16 %v85_v7, %v85_v7 }
  0xde   :  { %v88_v9 = vpop.f32.mrb[2].mxu1 }
  0xdf   :  { %v1356_v10 = vpop.f32.mrb[3].mxu1  ;;  %v1663_v20 = vpack.c.bf16 %v88_v9, %v88_v9 }
  0xe4   :  { %v150_v11 = vpop.f32.mrb[4].mxu1 }
  0xe5   :  { %v1647_v12 = vpack.c.bf16 %v150_v11, %v150_v11  ;;  %v1363_v13 = vpop.f32.mrb[5].mxu1 }
  0xe6   :  { %v153_v14 = vpop.f32.mrb[6].mxu1 }
  0xe7   :  { %v1649_v15 = vpack.c.bf16 %v153_v14, %v153_v14  ;;  %v1364_v16 = vpop.f32.mrb[7].mxu1  ;;  %v174_v17 = vsel %vm169_vm2, %v1647_v12, 0 }
  0xe8   :  { %1366 = vmatpush3.bf16.xpose.msra.mxu0 %v174_v17 }
  0xe9   :  { %335 = vrot.lane.b32.xlu1 %v1649_v15, %s1573_s1  ;;  %v220_v18 = vsel %vm169_vm2, %v1649_v15, 0  ;;  %1377 = vmatprep.subr.bf16.mxu0 %v1571_v1 }
  0xea   :  { %1372 = vmatpush3.bf16.xpose.msra.mxu1 %v220_v18 }
  0xeb   :  { %1383 = vmatprep.subr.bf16.mxu1 %v1571_v1 }
  0xed   :  { %437 = vrot.lane.b32.xlu1 %v1649_v15, %s1574_s3 }
  0xef   :  { %1368 = vmatmul.mubr.msk.bf16.vlgmr.msra.gmra.mrb[0].mxu0 %vm169_vm2, %v1659_v19 }
  0xf0   :  { %1379 = vmatprep.mubr.msk.bf16.mxu0 %vm1572_vm0, %v1571_v1 }
  0xf1   :  { %1374 = vmatmul.mubr.msk.bf16.vlgmr.msra.gmra.mrb[8].mxu1 %vm169_vm2, %v1663_v20 }
  0xf2   :  { %1385 = vmatprep.mubr.msk.bf16.mxu1 %vm1572_vm0, %v1571_v1 }
 0x15b   :  { %v336_v21 = vpop.permute.xlu1 %335 }
 0x15c   :  { %v341_v22 = vsel %vm291_vm3, %v336_v21, 0 }
 0x15d   :  { %1384 = vmatpush3.bf16.msra.mxu1 %v341_v22 }
 0x15e   :  { %1395 = vmatprep.subr.bf16.mxu1 %v1571_v1 }
 0x15f   :  { %v438_v33 = vpop.permute.xlu1 %437 }
 0x160   :  { %v443_v50 = vsel %vm169_vm2, %v438_v33, 0 }
 0x1c2   :  { %v210_v23 = vpop.f32.mrb[0].mxu0 }
 0x1c3   :  { %v1369_v24 = vpop.f32.mrb[1].mxu0  ;;  %v262_v25 = vsel %vm169_vm2, %v210_v23, -inf }
 0x1c4   :  { %v213_v26 = vpop.f32.mrb[2].mxu0  ;;  %263 = vmax.xlane.f32.xlu1 %v262_v25  ;;  %v256_v27 = vpop.f32.mrb[8].mxu1 }
 0x1c5   :  { %v1370_v28 = vpop.f32.mrb[3].mxu0  ;;  %v1375_v29 = vpop.f32.mrb[9].mxu1  ;;  %v265_v30 = vsel %vm169_vm2, %v256_v27, -inf }
 0x1c6   :  { %266 = vmax.xlane.f32.xlu0 %v265_v30  ;;  %v259_v31 = vpop.f32.mrb[10].mxu1 }
 0x1c7   :  { %v1376_v32 = vpop.f32.mrb[11].mxu1 }
 0x1d5   :  { %286 = vrot.lane.b32.xlu1 %v1647_v12, %s1573_s1 }
 0x1d9   :  { %385 = vrot.lane.b32.xlu1 %v1659_v19, %s1574_s3 }
 0x251   :  { %v264_v34 = vpop.xlane.xlu1 %263 }
 0x252   :  { %v268_v42 = vsub.f32 %v210_v23, %v264_v34 }
 0x253   :  { %v267_v35 = vpop.xlane.xlu0 %266 }
 0x254   :  { %v269_v36 = vsub.f32 %v256_v27, %v267_v35  ;;  %v270_v43 = vmul.f32 1.442695, %v268_v42 }
 0x255   :  { %v287_v37 = vpop.permute.xlu1 %286 }
 0x256   :  { %v272_v38 = vmul.f32 1.442695, %v269_v36  ;;  %v293_v39 = vsel %vm291_vm3, %v287_v37, 0 }
 0x257   :  { %1378 = vmatpush3.bf16.msra.mxu0 %v293_v39 }
 0x258   :  { %1515 = vpow2.f32 %v272_v38  ;;  %1389 = vmatprep.subr.bf16.mxu0 %v1571_v1 }
 0x259   :  { %1517 = vpow2.f32 %v270_v43  ;;  %v386_v58 = vpop.permute.xlu1 %385 }
 0x262   :  { %v1516_v40 = vpop.eup %1515 }
 0x263   :  { %v277_v41 = vsel %vm169_vm2, %v1516_v40, 0.0  ;;  %v1518_v44 = vpop.eup %1517 }
 0x264   :  { %278 = vadd.xlane.f32.xlu0 %v277_v41  ;;  %v274_v45 = vsel %vm169_vm2, %v1518_v44, 0.0 }
 0x27a   :  { %435 = vrot.lane.b32.xlu0 %v1663_v20, %s1574_s3 }
 0x299   :  { %275 = vadd.xlane.f32.xlu0 %v274_v45 }
 0x2af   :  { %387 = vrot.lane.b32.xlu0 %v1647_v12, %s1574_s3 }
 0x2f1   :  { %v279_v46 = vpop.xlane.xlu0 %278 }
 0x2f2   :  { %1519 = vrcp.f32 %v279_v46 }
 0x2f5   :  { %v436_v51 = vpop.permute.xlu0 %435 }
 0x2fc   :  { %v1520_v47 = vpop.eup %1519 }
 0x2fd   :  { %v283_v48 = vmul.f32 %v1520_v47, %v1516_v40  ;;  %v1284_v47 = vld [vmem:[%s1840_s4 + $0x4] sm:$0xf] }
 0x2ff   :  { %v285_v49 = vpack.c.bf16 %v283_v48, %v283_v48  ;;  %v612_v48 = vsel %vm291_vm3, %v1284_v47, 0 }
 0x301   :  { %1386 = vmatmul.mubr.msk.bf16.vlgmr.msra.gmra.mrb[12].mxu1 %vm169_vm2, %v285_v49 }
 0x302   :  { %1396 = vmatpush3.bf16.xpose.msra.mxu1 %v443_v50  ;;  %1397 = vmatprep.mubr.msk.bf16.mxu1 %vm1572_vm0, %v1571_v1 }
 0x303   :  { %1407 = vmatprep.subr.bf16.mxu1 %v1571_v1 }
 0x309   :  { %1398 = vmatmul.mubr.msk.bf16.vlgmr.msra.gmra.mrb[16].mxu1 %vm169_vm2, %v436_v51 }
 0x30a   :  { %1409 = vmatprep.mubr.msk.bf16.mxu1 %vm1572_vm0, %v1571_v1 }
 0x326   :  { %v276_v52 = vpop.xlane.xlu0 %275 }
 0x327   :  { %1521 = vrcp.f32 %v276_v52 }
 0x32a   :  { %v388_v55 = vpop.permute.xlu0 %387 }
 0x32b   :  { %v393_v57 = vsel %vm169_vm2, %v388_v55, 0 }
 0x331   :  { %v1522_v53 = vpop.eup %1521 }
 0x332   :  { %v281_v54 = vmul.f32 %v1522_v53, %v1518_v44 }
 0x334   :  { %v284_v56 = vpack.c.bf16 %v281_v54, %v281_v54 }
 0x336   :  { %1380 = vmatmul.mubr.msk.bf16.vlgmr.msra.gmra.mrb[4].mxu0 %vm169_vm2, %v284_v56 }
 0x337   :  { %1390 = vmatpush3.bf16.xpose.msra.mxu0 %v393_v57  ;;  %1391 = vmatprep.mubr.msk.bf16.mxu0 %vm1572_vm0, %v1571_v1 }
 0x338   :  { %1401 = vmatprep.subr.bf16.mxu0 %v1571_v1 }
 0x33e   :  { %1392 = vmatmul.mubr.msk.bf16.vlgmr.msra.gmra.mrb[8].mxu0 %vm169_vm2, %v386_v58 }
 0x33f   :  { %1403 = vmatprep.mubr.msk.bf16.mxu0 %vm1572_vm0, %v1571_v1 }
 0x3d4   :  { %v1705_v59 = vpop.f32.mrb[12].mxu1 }
 0x3d5   :  { %v1387_v60 = vpop.f32.mrb[13].mxu1 }
 0x3d6   :  { %v380_v61 = vpop.f32.mrb[14].mxu1 }
 0x3d7   :  { %v1388_v62 = vpop.f32.mrb[15].mxu1 }
 0x3dc   :  { %v479_v63 = vpop.f32.mrb[16].mxu1 }
 0x3dd   :  { %v1399_v0 = vpop.f32.mrb[17].mxu1  ;;  %v488_v2 = vsel %vm169_vm2, %v479_v63, -inf }
 0x3de   :  { %489 = vmax.xlane.f32.xlu1 %v488_v2  ;;  %v482_v3 = vpop.f32.mrb[18].mxu1  ;;  %v384_v0 = vld [vmem:[%s1840_s4] sm:$0xf] }
 0x3df   :  { %v1400_v4 = vpop.f32.mrb[19].mxu1 }
 0x3ef   :  { %557 = vrot.lane.b32.xlu1 %v1649_v15, %s1575_s28 }
 0x3f3   :  { %702 = vrot.lane.b32.xlu1 %v1659_v19, %s1576_s29 }
 0x3f7   :  { %754 = vrot.lane.b32.xlu1 %v1649_v15, %s1576_s29 }
 0x3fb   :  { %752 = vrot.lane.b32.xlu1 %v1663_v20, %s1576_s29 }
 0x409   :  { %v1715_v5 = vpop.f32.mrb[4].mxu0 }
 0x40a   :  { %v383_v6 = vpack.c.bf16 %v1705_v59, %v1715_v5  ;;  %v1381_v7 = vpop.f32.mrb[5].mxu0 }
 0x40b   :  { %v332_v8 = vpop.f32.mrb[6].mxu0  ;;  %v659_v7 = vsel %vm291_vm3, %v384_v0, 0 }
 0x40c   :  { %v1382_v9 = vpop.f32.mrb[7].mxu0 }
 0x411   :  { %v429_v10 = vpop.f32.mrb[8].mxu0 }
 0x412   :  { %v1393_v11 = vpop.f32.mrb[9].mxu0  ;;  %v485_v16 = vsel %vm169_vm2, %v429_v10, -inf }
 0x413   :  { %v432_v13 = vpop.f32.mrb[10].mxu0 }
 0x414   :  { %v1394_v14 = vpop.f32.mrb[11].mxu0 }
 0x41f   :  { %486 = vmax.xlane.f32.xlu1 %v485_v16 }
 0x430   :  { %509 = vrot.lane.b32.xlu1 %v1647_v12, %s1575_s28 }
 0x434   :  { %874 = vrot.lane.b32.xlu1 %v1649_v15, %s1577_s30 }
 0x438   :  { %976 = vrot.lane.b32.xlu1 %v1647_v12, %s1578_s6 }
 0x43c   :  { %1026 = vrot.lane.b32.xlu1 %v1649_v15, %s1578_s6 }
 0x440   :  { %974 = vrot.lane.b32.xlu1 %v1659_v19, %s1578_s6 }
 0x444   :  { %1024 = vrot.lane.b32.xlu1 %v1663_v20, %s1578_s6 }
 0x46b   :  { %v490_v17 = vpop.xlane.xlu1 %489 }
 0x46c   :  { %v492_v18 = vsub.f32 %v479_v63, %v490_v17 }
 0x46e   :  { %v495_v21 = vmul.f32 1.442695, %v492_v18 }
 0x46f   :  { %v558_v22 = vpop.permute.xlu1 %557 }
 0x470   :  { %1523 = vpow2.f32 %v495_v21  ;;  %v563_v23 = vsel %vm291_vm3, %v558_v22, 0 }
 0x471   :  { %1408 = vmatpush3.bf16.msra.mxu1 %v563_v23 }
 0x472   :  { %1425 = vmatprep.subr.bf16.mxu1 %v1571_v1 }
 0x473   :  { %v703_v19 = vpop.permute.xlu1 %702 }
 0x477   :  { %v755_v26 = vpop.permute.xlu1 %754 }
 0x478   :  { %v760_v40 = vsel %vm169_vm2, %v755_v26, 0 }
 0x47a   :  { %v1524_v24 = vpop.eup %1523 }
 0x47b   :  { %v500_v25 = vsel %vm169_vm2, %v1524_v24, 0.0  ;;  %v753_v20 = vpop.permute.xlu1 %752 }
 0x47c   :  { %501 = vadd.xlane.f32.xlu0 %v500_v25 }
 0x492   :  { %704 = vrot.lane.b32.xlu0 %v1647_v12, %s1576_s29 }
 0x4ac   :  { %v487_v27 = vpop.xlane.xlu1 %486 }
 0x4ad   :  { %v491_v28 = vsub.f32 %v429_v10, %v487_v27 }
 0x4af   :  { %v493_v29 = vmul.f32 1.442695, %v491_v28 }
 0x4b0   :  { %v510_v30 = vpop.permute.xlu1 %509 }
 0x4b1   :  { %1525 = vpow2.f32 %v493_v29  ;;  %v515_v31 = vsel %vm291_vm3, %v510_v30, 0 }
 0x4b2   :  { %1402 = vmatpush3.bf16.msra.mxu0 %v515_v31 }
 0x4b3   :  { %1413 = vmatprep.subr.bf16.mxu0 %v1571_v1 }
 0x4b4   :  { %v875_v41 = vpop.permute.xlu1 %874 }
 0x4b5   :  { %v880_v42 = vsel %vm291_vm3, %v875_v41, 0 }
 0x4b8   :  { %v977_v27 = vpop.permute.xlu1 %976 }
 0x4b9   :  { %v982_v30 = vsel %vm169_vm2, %v977_v27, 0 }
 0x4bb   :  { %v1526_v32 = vpop.eup %1525 }
 0x4bc   :  { %v497_v33 = vsel %vm169_vm2, %v1526_v32, 0.0  ;;  %v1027_v31 = vpop.permute.xlu1 %1026 }
 0x4bd   :  { %498 = vadd.xlane.f32.xlu0 %v497_v33  ;;  %v1291_v33 = vld [vmem:[%s1840_s4 + $0x8] sm:$0xf] }
 0x509   :  { %v502_v34 = vpop.xlane.xlu0 %501 }
 0x50a   :  { %1527 = vrcp.f32 %v502_v34  ;;  %v929_v34 = vsel %vm291_vm3, %v1291_v33, 0 }
 0x50d   :  { %v705_v37 = vpop.permute.xlu0 %704 }
 0x50e   :  { %v710_v39 = vsel %vm169_vm2, %v705_v37, 0 }
 0x514   :  { %v1528_v35 = vpop.eup %1527 }
 0x515   :  { %v506_v36 = vmul.f32 %v1528_v35, %v1524_v24 }
 0x517   :  { %v508_v38 = vpack.c.bf16 %v506_v36, %v506_v36 }
 0x519   :  { %1410 = vmatmul.mubr.msk.bf16.vlgmr.msra.gmra.mrb[20].mxu1 %vm169_vm2, %v508_v38 }
 0x51a   :  { %1426 = vmatpush3.bf16.xpose.msra.mxu1 %v710_v39  ;;  %1427 = vmatprep.mubr.msk.bf16.mxu1 %vm1572_vm0, %v1571_v1 }
 0x51b   :  { %1431 = vmatprep.subr.bf16.mxu1 %v1571_v1 }
 0x521   :  { %1428 = vmatmul.mubr.msk.bf16.vlgmr.msra.gmra.mrb[24].mxu1 %vm169_vm2, %v703_v19 }
 0x522   :  { %1432 = vmatpush3.bf16.xpose.msra.mxu1 %v760_v40  ;;  %1433 = vmatprep.mubr.msk.bf16.mxu1 %vm1572_vm0, %v1571_v1 }
 0x523   :  { %1443 = vmatprep.subr.bf16.mxu1 %v1571_v1 }
 0x529   :  { %1434 = vmatmul.mubr.msk.bf16.vlgmr.msra.gmra.mrb[28].mxu1 %vm169_vm2, %v753_v20 }
 0x52a   :  { %1444 = vmatpush3.bf16.msra.mxu1 %v880_v42  ;;  %1445 = vmatprep.mubr.msk.bf16.mxu1 %vm1572_vm0, %v1571_v1 }
 0x52b   :  { %1455 = vmatprep.subr.bf16.mxu1 %v1571_v1 }
 0x54a   :  { %v499_v43 = vpop.xlane.xlu0 %498 }
 0x54b   :  { %1529 = vrcp.f32 %v499_v43  ;;  %v1032_v43 = vsel %vm169_vm2, %v1027_v31, 0 }
 0x555   :  { %v1530_v44 = vpop.eup %1529 }
 0x556   :  { %v504_v45 = vmul.f32 %v1530_v44, %v1526_v32  ;;  %v975_v32 = vpop.permute.xlu1 %974 }
 0x558   :  { %v507_v46 = vpack.c.bf16 %v504_v45, %v504_v45 }
 0x55a   :  { %1404 = vmatmul.mubr.msk.bf16.vlgmr.msra.gmra.mrb[12].mxu0 %vm169_vm2, %v507_v46 }
 0x55b   :  { %1415 = vmatprep.mubr.msk.bf16.mxu0 %vm1572_vm0, %v1571_v1  ;;  %1414 = vmatpush3.bf16.msra.mxu0 %v612_v48  ;;  %v1025_v48 = vpop.permute.xlu1 %1024 }
 0x55c   :  { %1419 = vmatprep.subr.bf16.mxu0 %v1571_v1 }
 0x5ec   :  { %v599_v49 = vpop.f32.mrb[20].mxu1 }
 0x5ed   :  { %v1411_v50 = vpop.f32.mrb[21].mxu1 }
 0x5ee   :  { %v602_v51 = vpop.f32.mrb[22].mxu1 }
 0x5ef   :  { %v1412_v52 = vpop.f32.mrb[23].mxu1 }
 0x5f4   :  { %v746_v53 = vpop.f32.mrb[24].mxu1 }
 0x5f5   :  { %v1429_v54 = vpop.f32.mrb[25].mxu1  ;;  %v802_v55 = vsel %vm169_vm2, %v746_v53, -inf }
 0x5f6   :  { %803 = vmax.xlane.f32.xlu0 %v802_v55  ;;  %v749_v56 = vpop.f32.mrb[26].mxu1 }
 0x5f7   :  { %v1430_v57 = vpop.f32.mrb[27].mxu1 }
 0x5fc   :  { %v796_v58 = vpop.f32.mrb[28].mxu1 }
 0x5fd   :  { %v1435_v60 = vpop.f32.mrb[29].mxu1  ;;  %v805_v61 = vsel %vm169_vm2, %v796_v58, -inf }
 0x5fe   :  { %806 = vmax.xlane.f32.xlu0 %v805_v61  ;;  %v799_v62 = vpop.f32.mrb[30].mxu1 }
 0x5ff   :  { %v1436_v63 = vpop.f32.mrb[31].mxu1 }
 0x62d   :  { %v551_v2 = vpop.f32.mrb[12].mxu0 }
 0x62e   :  { %v605_v3 = vpack.c.bf16 %v599_v49, %v551_v2  ;;  %v1405_v4 = vpop.f32.mrb[13].mxu0 }
 0x62f   :  { %v554_v8 = vpop.f32.mrb[14].mxu0 }
 0x630   :  { %v1406_v9 = vpop.f32.mrb[15].mxu0  ;;  %1416 = vmatmul.mubr.msk.bf16.vlgmr.msra.gmra.mrb[16].mxu0 %vm169_vm2, %v605_v3 }
 0x631   :  { %1420 = vmatpush3.bf16.msra.mxu0 %v659_v7  ;;  %1421 = vmatprep.mubr.msk.bf16.mxu0 %vm1572_vm0, %v1571_v1 }
 0x632   :  { %1437 = vmatprep.subr.bf16.mxu0 %v1571_v1 }
 0x63c   :  { %1422 = vmatmul.mubr.msk.bf16.vlgmr.msra.gmra.mrb[16].mxu0 %vm169_vm2, %v383_v6 }
 0x63d   :  { %1439 = vmatprep.mubr.msk.bf16.mxu0 %vm1572_vm0, %v1571_v1 }
 0x683   :  { %v804_v10 = vpop.xlane.xlu0 %803 }
 0x684   :  { %v808_v11 = vsub.f32 %v746_v53, %v804_v10 }
 0x686   :  { %v810_v13 = vmul.f32 1.442695, %v808_v11 }
 0x688   :  { %1531 = vpow2.f32 %v810_v13 }
 0x68b   :  { %v807_v14 = vpop.xlane.xlu0 %806 }
 0x68c   :  { %v809_v16 = vsub.f32 %v796_v58, %v807_v14 }
 0x68e   :  { %v812_v17 = vmul.f32 1.442695, %v809_v16 }
 0x690   :  { %1533 = vpow2.f32 %v812_v17  ;;  %v1297_v17 = vld [vmem:[%s1840_s4 + $0xc] sm:$0xf]  ;;  %s1580_s4 = smov [#allocation2]  }
 0x691   :  { %s1253_s16 = sshll.u32 %s1580_s4, 4  ;;  %s1254_s16 = int_to_ptr.vmem [resolvable:$true] %s1253_s16 }
 0x692   :  { %v1532_v18 = vpop.eup %1531  ;;  %s1547_s17 = scalar_lea.vmem %s1254_s16, 256  ;;  %p1552_p1 = scmp.lt.s32.totalorder %s1254_s16, %s1254_s16 }
 0x693   :  { %v814_v21 = vsel %vm169_vm2, %v1532_v18, 0.0  ;;  %p1548_p0 = scmp.ne.s32.totalorder %s1254_s16, %s1547_s17  ;;  %p1553_p2 = scmp.lt.s32.totalorder %s1547_s17, %s1547_s17 }
 0x694   :  { %815 = vadd.xlane.f32.xlu0 %v814_v21 }
 0x695   :  { %p1554_p3 = por %p1553_p2, %p1552_p1 }
 0x697   :  { %p1555_p4 = pnand %p1554_p3, %p1548_p0 }
 0x69a   :  { %v1534_v22 = vpop.eup %1533 }
 0x69b   :  { %v817_v59 = vsel %vm169_vm2, %v1534_v22, 0.0 }
 0x69c   :  { %818 = vadd.xlane.f32.xlu0 %v817_v59 }
 0x6b2   :  { %826 = vrot.lane.b32.xlu0 %v1647_v12, %s1577_s30 }
 0x721   :  { %v816_v5 = vpop.xlane.xlu0 %815 }
 0x722   :  { %1535 = vrcp.f32 %v816_v5 }
 0x729   :  { %v819_v6 = vpop.xlane.xlu0 %818 }
 0x72a   :  { %1537 = vrcp.f32 %v819_v6 }
 0x72c   :  { %v1536_v23 = vpop.eup %1535 }
 0x72d   :  { %v821_v24 = vmul.f32 %v1536_v23, %v1532_v18  ;;  %v827_v25 = vpop.permute.xlu0 %826 }
 0x72e   :  { %v832_v19 = vsel %vm291_vm3, %v827_v25, 0 }
 0x72f   :  { %1438 = vmatpush3.bf16.msra.mxu0 %v832_v19  ;;  %v824_v26 = vpack.c.bf16 %v821_v24, %v821_v24 }
 0x730   :  { %1449 = vmatprep.subr.bf16.mxu0 %v1571_v1 }
 0x732   :  { %1440 = vmatmul.mubr.msk.bf16.vlgmr.msra.gmra.mrb[20].mxu0 %vm169_vm2, %v824_v26 }
 0x733   :  { %1451 = vmatprep.mubr.msk.bf16.mxu0 %vm1572_vm0, %v1571_v1  ;;  %1450 = vmatpush3.bf16.msra.mxu0 %v929_v34 }
 0x734   :  { %v1538_v20 = vpop.eup %1537  ;;  %1461 = vmatprep.subr.bf16.mxu0 %v1571_v1 }
 0x735   :  { %v823_v28 = vmul.f32 %v1538_v20, %v1534_v22  ;;  %v1201_v22 = vsel %vm291_vm3, %v1297_v17, 0 }
 0x737   :  { %v825_v29 = vpack.c.bf16 %v823_v28, %v823_v28 }
 0x739   :  { %1446 = vmatmul.mubr.msk.bf16.vlgmr.msra.gmra.mrb[32].mxu1 %vm169_vm2, %v825_v29 }
 0x73a   :  { %1456 = vmatpush3.bf16.xpose.msra.mxu1 %v982_v30  ;;  %1457 = vmatprep.mubr.msk.bf16.mxu1 %vm1572_vm0, %v1571_v1 }
 0x73b   :  { %1467 = vmatprep.subr.bf16.mxu1 %v1571_v1 }
 0x741   :  { %1458 = vmatmul.mubr.msk.bf16.vlgmr.msra.gmra.mrb[36].mxu1 %vm169_vm2, %v975_v32 }
 0x742   :  { %1469 = vmatprep.mubr.msk.bf16.mxu1 %vm1572_vm0, %v1571_v1 }
 0x805   :  { %v868_v35 = vpop.f32.mrb[20].mxu0 }
 0x806   :  { %v1441_v36 = vpop.f32.mrb[21].mxu0 }
 0x807   :  { %v871_v37 = vpop.f32.mrb[22].mxu0 }
 0x808   :  { %v1442_v38 = vpop.f32.mrb[23].mxu0 }
 0x80c   :  { %v916_v39 = vpop.f32.mrb[32].mxu1 }
 0x80d   :  { %v922_v40 = vpack.c.bf16 %v916_v39, %v868_v35  ;;  %v1447_v41 = vpop.f32.mrb[33].mxu1 }
 0x80e   :  { %v919_v42 = vpop.f32.mrb[34].mxu1 }
 0x80f   :  { %v1448_v44 = vpop.f32.mrb[35].mxu1  ;;  %1452 = vmatmul.mubr.msk.bf16.vlgmr.msra.gmra.mrb[16].mxu0 %vm169_vm2, %v922_v40 }
 0x810   :  { %1462 = vmatpush3.bf16.xpose.msra.mxu0 %v1032_v43  ;;  %1463 = vmatprep.mubr.msk.bf16.mxu0 %vm1572_vm0, %v1571_v1 }
 0x811   :  { %1473 = vmatprep.subr.bf16.mxu0 %v1571_v1 }
 0x814   :  { %v1018_v45 = vpop.f32.mrb[36].mxu1 }
 0x815   :  { %v1459_v46 = vpop.f32.mrb[37].mxu1  ;;  %v1074_v47 = vsel %vm169_vm2, %v1018_v45, -inf }
 0x816   :  { %1075 = vmax.xlane.f32.xlu1 %v1074_v47  ;;  %v1021_v49 = vpop.f32.mrb[38].mxu1 }
 0x817   :  { %v1460_v50 = vpop.f32.mrb[39].mxu1  ;;  %1464 = vmatmul.mubr.msk.bf16.vlgmr.msra.gmra.mrb[24].mxu0 %vm169_vm2, %v1025_v48 }
 0x818   :  { %1475 = vmatprep.mubr.msk.bf16.mxu0 %vm1572_vm0, %v1571_v1 }
 0x8a3   :  { %v1076_v51 = vpop.xlane.xlu1 %1075 }
 0x8a4   :  { %v1080_v52 = vsub.f32 %v1018_v45, %v1076_v51 }
 0x8a6   :  { %v1082_v53 = vmul.f32 1.442695, %v1080_v52 }
 0x8a8   :  { %1539 = vpow2.f32 %v1082_v53 }
 0x8b2   :  { %v1540_v57 = vpop.eup %1539 }
 0x8b3   :  { %v1086_v61 = vsel %vm169_vm2, %v1540_v57, 0.0 }
 0x8ea   :  { %v1068_v54 = vpop.f32.mrb[24].mxu0 }
 0x8eb   :  { %v1465_v55 = vpop.f32.mrb[25].mxu0  ;;  %v1077_v56 = vsel %vm169_vm2, %v1068_v54, -inf }
 0x8ec   :  { %1078 = vmax.xlane.f32.xlu0 %v1077_v56  ;;  %v1071_v58 = vpop.f32.mrb[26].mxu0 }
 0x8ed   :  { %v1466_v60 = vpop.f32.mrb[27].mxu0 }
 0x8f0   :  { %1087 = vadd.xlane.f32.xlu0 %v1086_v61 }
 0x906   :  { %1098 = vrot.lane.b32.xlu0 %v1647_v12, %s1579_s13 }
 0x979   :  { %v1079_v62 = vpop.xlane.xlu0 %1078 }
 0x97a   :  { %v1081_v63 = vsub.f32 %v1068_v54, %v1079_v62 }
 0x97c   :  { %v1084_v0 = vmul.f32 1.442695, %v1081_v63 }
 0x97d   :  { %v1088_v2 = vpop.xlane.xlu0 %1087 }
 0x97e   :  { %1541 = vpow2.f32 %v1084_v0 }
 0x97f   :  { %1543 = vrcp.f32 %v1088_v2 }
 0x981   :  { %v1099_v3 = vpop.permute.xlu0 %1098 }
 0x982   :  { %v1104_v4 = vsel %vm291_vm3, %v1099_v3, 0 }
 0x983   :  { %1468 = vmatpush3.bf16.msra.mxu1 %v1104_v4 }
 0x988   :  { %v1542_v7 = vpop.eup %1541 }
 0x989   :  { %v1544_v8 = vpop.eup %1543  ;;  %v1089_v9 = vsel %vm169_vm2, %v1542_v7, 0.0 }
 0x98a   :  { %v1093_v10 = vmul.f32 %v1544_v8, %v1540_v57  ;;  %1090 = vadd.xlane.f32.xlu1 %v1089_v9 }
 0x98c   :  { %v1096_v11 = vpack.c.bf16 %v1093_v10, %v1093_v10 }
 0x98e   :  { %1470 = vmatmul.mubr.msk.bf16.vlgmr.msra.gmra.mrb[40].mxu1 %vm169_vm2, %v1096_v11 }
 0x99b   :  { %1146 = vrot.lane.b32.xlu1 %v1649_v15, %s1579_s13 }
 0xa17   :  { %v1091_v12 = vpop.xlane.xlu1 %1090 }
 0xa18   :  { %1545 = vrcp.f32 %v1091_v12 }
 0xa1b   :  { %v1147_v13 = vpop.permute.xlu1 %1146 }
 0xa1c   :  { %v1152_v14 = vsel %vm291_vm3, %v1147_v13, 0 }
 0xa1d   :  { %1474 = vmatpush3.bf16.msra.mxu0 %v1152_v14 }
 0xa1e   :  { %1479 = vmatprep.subr.bf16.mxu0 %v1571_v1 }
 0xa22   :  { %v1546_v16 = vpop.eup %1545 }
 0xa23   :  { %v1095_v18 = vmul.f32 %v1546_v16, %v1542_v7 }
 0xa25   :  { %v1097_v21 = vpack.c.bf16 %v1095_v18, %v1095_v18 }
 0xa27   :  { %1476 = vmatmul.mubr.msk.bf16.vlgmr.msra.gmra.mrb[28].mxu0 %vm169_vm2, %v1097_v21 }
 0xa28   :  { %1480 = vmatpush3.bf16.msra.mxu0 %v1201_v22  ;;  %1481 = vmatprep.mubr.msk.bf16.mxu0 %vm1572_vm0, %v1571_v1 }
 0xa61   :  { %v1140_v15 = vpop.f32.mrb[40].mxu1 }
 0xa62   :  { %v1471_v59 = vpop.f32.mrb[41].mxu1 }
 0xa63   :  { %v1143_v5 = vpop.f32.mrb[42].mxu1 }
 0xa64   :  { %v1472_v6 = vpop.f32.mrb[43].mxu1 }
 0xafa   :  { %v1188_v23 = vpop.f32.mrb[28].mxu0 }
 0xafb   :  { %v1194_v24 = vpack.c.bf16 %v1188_v23, %v1140_v15  ;;  %v1477_v25 = vpop.f32.mrb[29].mxu0 }
 0xafc   :  { %v1191_v19 = vpop.f32.mrb[30].mxu0 }
 0xafd   :  { %v1478_v26 = vpop.f32.mrb[31].mxu0  ;;  %1482 = vmatmul.mubr.msk.bf16.vlgmr.msra.gmra.mrb[16].mxu0 %vm169_vm2, %v1194_v24 }
 0xbd0   :  { %v1237_v20 = vpop.f32.mrb[16].mxu0 }
 0xbd1   :  { %1246 = vst.msk [vmem:[#allocation2] sm:$0xff] %vm47_vm1, %v1237_v20  ;;  %v1483_v27 = vpop.f32.mrb[17].mxu0 }
 0xbd2   :  { %v1240_v28 = vpop.f32.mrb[18].mxu0 }
 0xbd3   :  { %1247 = vst.msk [vmem:[#allocation2 + $0x8] sm:$0xff] %vm47_vm1, %v1240_v28  ;;  %v1484_v1 = vpop.f32.mrb[19].mxu0 }
 0xbd4   :  { %1558 = shalt.err (!%p1555_p4)
}
 0xbd5   :  { %s1559_s20 = scalar_lea.hbm %s1841_s5, 256 }
 0xbd6   :  { %p1560_p5 = scmp.ne.s32.totalorder %s1841_s5, %s1559_s20  ;;  %p1563_p6 = scmp.lt.u32.totalorder %s1559_s20, %s1841_s5 }
 0xbd8   :  { %p1565_p7 = pnand %p1563_p6, %p1560_p5 }
 0xbda   :  { %1568 = shalt.err (!%p1565_p7)
}
 0xbdb   :  { %s1581_s25 = smov 128   ;;  %s1582_s2 = smov 8  }
 0xbdc   :  { %1259 = dma.vmem_to_hbm [thread:$0]  %s1254_s16, 256, %s1841_s5, [#allocation3], %s1581_s25, %s1581_s25, %s1582_s2  }
 0xbdd   :  { %1569 = dma.done.wait [#allocation3], 256  }
 0xbde   :  { %1570 = vsyncadd [#allocation3], 4294967040 }
 0xbdf   :  { %1263 = vsyncpa [#allocation3], 1 }

</bundles_post_ra>
